<compile_context>
chip_gen: v5e
topology: v5e:2x2
jax: 0.10.0
libtpu: 0.0.40
codegen_flags: <defaults>
</compile_context>

<pallas_src>
import jax
import jax.numpy as jnp
import numpy as np
from jax import lax
from jax.experimental import pallas as pl
from jax.experimental.pallas import tpu as pltpu

EXPANSION = 4
BN_EPS = 1e-5


def bf16_round(a):
    """Round an f32 array through bf16 (used so kernel & reference see identical weights)."""
    return a.astype(jnp.bfloat16).astype(jnp.float32)


def fold_bn(gamma, beta, mean, var):
    scale = gamma / jnp.sqrt(var + BN_EPS)
    bias = beta - mean * scale
    return scale, bias


@jax.jit
def bottleneck_forward(x_nchw, params):
    """x_nchw: (N, Cin, H, W) float32 -> (N, Cout, H, W) float32."""
    (w1, s1, b1, w2, s2, b2, w3, s3, b3, ws, ss, bs) = params
    N, Cin, H, W = x_nchw.shape
    Cmid = w1.shape[0]
    Cout = w3.shape[0]
    HW = H * W
    PAD = W + 1                      # halo so every tap window stays in-bounds
    L = HW + 2 * PAD

    # Free reshape: NCHW is already channels-first; lane dim becomes H*W.
    x = x_nchw.reshape(N, Cin, HW).astype(jnp.bfloat16)

    # Conv weights as bf16 LHS operands.  w2 (OIHW) -> tap-major (9, Cout, Cin).
    w1_k = w1.astype(jnp.bfloat16)                                    # (Cmid, Cin)
    w2_k = jnp.transpose(w2, (2, 3, 0, 1)).reshape(9, Cmid, Cmid)
    w2_k = w2_k.astype(jnp.bfloat16)                                  # (9, Cmid, Cmid)
    w3_k = w3.astype(jnp.bfloat16)                                    # (Cout, Cmid)
    ws_k = ws.astype(jnp.bfloat16)                                    # (Cout, Cin)

    # Folded BN scale/bias, f32, shaped (C, 1) to broadcast over the lane axis.
    col = lambda v: v.reshape(-1, 1).astype(jnp.float32)
    s1c, b1c, s2c, b2c = col(s1), col(b1), col(s2), col(b2)
    s3c, b3c, ssc, bsc = col(s3), col(b3), col(ss), col(bs)

    # Column-wrap masks for the dw = -1 / +1 taps (flat lane shifts wrap across
    # image rows at the left/right borders).  Precomputed once in the wrapper.
    wpos = jnp.arange(HW, dtype=jnp.int32) % W
    cmask = jnp.stack([wpos >= 1, wpos <= W - 2]).astype(jnp.bfloat16)  # (2, HW)

    taps = [(dh, dw) for dh in (-1, 0, 1) for dw in (-1, 0, 1)]

    def kernel(x_ref,
               w1_ref, s1_ref, b1_ref,
               w2_ref, s2_ref, b2_ref,
               w3_ref, s3_ref, b3_ref,
               ws_ref, ss_ref, bs_ref,
               cm_ref,
               o_ref,
               pad_ref):
        xb = x_ref[0, :, :]                                   # (Cin, HW) bf16

        # ---- shortcut 1x1 conv -> BN (issued first; see header) -------------
        sc = jnp.dot(ws_ref[...], xb, preferred_element_type=jnp.float32)
        sc = sc * ss_ref[...] + bs_ref[...]

        # ---- 1x1 conv -> BN -> ReLU -----------------------------------------
        h1 = jnp.dot(w1_ref[...], xb, preferred_element_type=jnp.float32)
        h1 = jnp.maximum(h1 * s1_ref[...] + b1_ref[...], 0.0)

        # ---- 3x3 conv (padding=1, stride=1) -> BN -> ReLU ---------------------
        # Flat lane-padded scratch: only the (Cmid, W+1) halos are zeroed; the
        # interior is overwritten every step.  Each tap is a static lane-window
        # read + (for dw != 0) a column-mask multiply + one MXU matmul.
        pad_ref[:, 0:PAD] = jnp.zeros((Cmid, PAD), jnp.bfloat16)
        pad_ref[:, PAD + HW:L] = jnp.zeros((Cmid, PAD), jnp.bfloat16)
        pad_ref[:, PAD:PAD + HW] = h1.astype(jnp.bfloat16)

        m_left = cm_ref[0:1, :]        # valid where w - 1 >= 0
        m_right = cm_ref[1:2, :]       # valid where w + 1 <  W

        acc = jnp.zeros((Cmid, HW), jnp.float32)
        for t, (dh, dw) in enumerate(taps):
            start = PAD + dh * W + dw
            tap = pad_ref[:, start:start + HW]                # (Cmid, HW) bf16
            if dw == -1:
                tap = tap * m_left
            elif dw == 1:
                tap = tap * m_right
            acc = acc + jnp.dot(w2_ref[t], tap,
                                preferred_element_type=jnp.float32)
        h2 = jnp.maximum(acc * s2_ref[...] + b2_ref[...], 0.0)

        # ---- 1x1 expansion conv -> BN (Dropout p=0.0 is the identity) --------
        h3 = jnp.dot(w3_ref[...], h2.astype(jnp.bfloat16),
                     preferred_element_type=jnp.float32)
        h3 = h3 * s3_ref[...] + b3_ref[...]

        # ---- residual add + final ReLU; (Cout, HW) store is lane-dense --------
        o_ref[0, :, :] = jnp.maximum(h3 + sc, 0.0).astype(o_ref.dtype)

    def full(arr):
        nd = arr.ndim
        return pl.BlockSpec(arr.shape, lambda n: (0,) * nd)

    out = pl.pallas_call(
        kernel,
        out_shape=jax.ShapeDtypeStruct((N, Cout, HW), jnp.float32),
        grid_spec=pltpu.PrefetchScalarGridSpec(
            num_scalar_prefetch=0,
            grid=(N,),
            in_specs=[
                pl.BlockSpec((1, Cin, HW), lambda n: (n, 0, 0)),
                full(w1_k), full(s1c), full(b1c),
                full(w2_k), full(s2c), full(b2c),
                full(w3_k), full(s3c), full(b3c),
                full(ws_k), full(ssc), full(bsc),
                full(cmask),
            ],
            out_specs=pl.BlockSpec((1, Cout, HW), lambda n: (n, 0, 0)),
            scratch_shapes=[pltpu.VMEM((Cmid, L), jnp.bfloat16)],
        ),
        compiler_params=pltpu.CompilerParams(
            dimension_semantics=("parallel",),
            vmem_limit_bytes=32 * 1024 * 1024,
        ),
    )(x, w1_k, s1c, b1c, w2_k, s2c, b2c, w3_k, s3c, b3c, ws_k, ssc, bsc, cmask)

    return out.reshape(N, Cout, H, W)


def reference_forward(x, params):
    """Pure-JAX NCHW reference (inference-mode BN).  Intermediates h1/h2 are
    passed through bf16 to match the kernel's internal bf16 storage, so the
    check isolates structural correctness (taps, masks, BN, residual)."""
    (w1, s1, b1, w2, s2, b2, w3, s3, b3, ws, ss, bs) = params
    hi = lax.Precision.HIGHEST
    bn = lambda h, s, b: h * s.reshape(1, -1, 1, 1) + b.reshape(1, -1, 1, 1)
    c1x1 = lambda h, w: jnp.einsum('nchw,dc->ndhw', h, w, precision=hi)

    h = jax.nn.relu(bn(c1x1(x, w1), s1, b1))
    h = bf16_round(h)
    h = lax.conv_general_dilated(h, w2, (1, 1), ((1, 1), (1, 1)),
                                 dimension_numbers=('NCHW', 'OIHW', 'NCHW'),
                                 precision=hi)
    h = jax.nn.relu(bn(h, s2, b2))
    h = bf16_round(h)
    h = bn(c1x1(h, w3), s3, b3)
    sc = bn(c1x1(x, ws), ss, bs)
    return jax.nn.relu(h + sc)


def make_params(key, in_channels, out_channels):
    Cin, Cmid = in_channels, out_channels
    Cout = out_channels * EXPANSION
    ks = jax.random.split(key, 8)

    def bn_params(k, c):
        k1, k2, k3, k4 = jax.random.split(k, 4)
        gamma = jax.random.uniform(k1, (c,), jnp.float32, 0.5, 1.5)
        beta = 0.1 * jax.random.normal(k2, (c,), jnp.float32)
        mean = 0.1 * jax.random.normal(k3, (c,), jnp.float32)
        var = jax.random.uniform(k4, (c,), jnp.float32, 0.5, 1.5)
        return fold_bn(gamma, beta, mean, var)

    # Conv weights in PyTorch-style layouts (1x1 convs squeezed to (Cout, Cin)),
    # pre-rounded through bf16 so kernel (bf16 MXU) and reference see the same values.
    w1 = bf16_round(0.2 * jax.random.normal(ks[0], (Cmid, Cin), jnp.float32))
    s1, b1 = bn_params(ks[1], Cmid)
    w2 = bf16_round(0.2 * jax.random.normal(ks[2], (Cmid, Cmid, 3, 3), jnp.float32))
    s2, b2 = bn_params(ks[3], Cmid)
    w3 = bf16_round(0.2 * jax.random.normal(ks[4], (Cout, Cmid), jnp.float32))
    s3, b3 = bn_params(ks[5], Cout)
    ws = bf16_round(0.2 * jax.random.normal(ks[6], (Cout, Cin), jnp.float32))
    ss, bs = bn_params(ks[7], Cout)
    return (w1, s1, b1, w2, s2, b2, w3, s3, b3, ws, ss, bs)


if __name__ == "__main__":
    # BottleNeck(in_channels=4, out_channels=4, stride=1, dropout=0.0)
    # -> shortcut has its own conv+BN since in_channels != out_channels*4.
    N, Cin, H, W = 2, 4, 16, 16
    out_channels = 4
    Cout = out_channels * EXPANSION

    key = jax.random.PRNGKey(0)
    kx, kp = jax.random.split(key)
    x = bf16_round(jax.random.normal(kx, (N, Cin, H, W), jnp.float32))  # NCHW
    params = make_params(kp, Cin, out_channels)

    out = jax.block_until_ready(bottleneck_forward(x, params))
    ref = jax.block_until_ready(reference_forward(x, params))

    assert out.shape == (N, Cout, H, W), out.shape
    np.testing.assert_allclose(np.asarray(out), np.asarray(ref),
                               rtol=1e-2, atol=1e-2)
    print("KERNEL_OK")
</pallas_src>

<mosaic_0001>
module attributes {stable_mosaic.version = 11 : i64} {
  func.func @kernel(%arg0: i32, %arg1: memref<1x4x256xbf16, #tpu.memory_space<vmem>>, %arg2: memref<4x4xbf16, #tpu.memory_space<vmem>>, %arg3: memref<4x1xf32, #tpu.memory_space<vmem>>, %arg4: memref<4x1xf32, #tpu.memory_space<vmem>>, %arg5: memref<9x4x4xbf16, #tpu.memory_space<vmem>>, %arg6: memref<4x1xf32, #tpu.memory_space<vmem>>, %arg7: memref<4x1xf32, #tpu.memory_space<vmem>>, %arg8: memref<16x4xbf16, #tpu.memory_space<vmem>>, %arg9: memref<16x1xf32, #tpu.memory_space<vmem>>, %arg10: memref<16x1xf32, #tpu.memory_space<vmem>>, %arg11: memref<16x4xbf16, #tpu.memory_space<vmem>>, %arg12: memref<16x1xf32, #tpu.memory_space<vmem>>, %arg13: memref<16x1xf32, #tpu.memory_space<vmem>>, %arg14: memref<2x256xbf16, #tpu.memory_space<vmem>>, %arg15: memref<1x16x256xf32, #tpu.memory_space<vmem>>, %arg16: memref<4x290xbf16, #tpu.memory_space<vmem>>) attributes {dimension_semantics = [#tpu.dimension_semantics<parallel>], iteration_bounds = array<i64: 2>, scalar_prefetch = 0 : i64, scratch_operands = 1 : i64, tpu.core_type = #tpu.core_type<tc>, window_params = [{transform_indices = @transform_0, window_bounds = array<i64: 1, 4, 256>}, {pipeline_mode = #tpu.pipeline_mode<synchronous>, transform_indices = @transform_1, window_bounds = array<i64: 4, 4>}, {pipeline_mode = #tpu.pipeline_mode<synchronous>, transform_indices = @transform_2, window_bounds = array<i64: 4, 1>}, {pipeline_mode = #tpu.pipeline_mode<synchronous>, transform_indices = @transform_3, window_bounds = array<i64: 4, 1>}, {pipeline_mode = #tpu.pipeline_mode<synchronous>, transform_indices = @transform_4, window_bounds = array<i64: 9, 4, 4>}, {pipeline_mode = #tpu.pipeline_mode<synchronous>, transform_indices = @transform_5, window_bounds = array<i64: 4, 1>}, {pipeline_mode = #tpu.pipeline_mode<synchronous>, transform_indices = @transform_6, window_bounds = array<i64: 4, 1>}, {pipeline_mode = #tpu.pipeline_mode<synchronous>, transform_indices = @transform_7, window_bounds = array<i64: 16, 4>}, {pipeline_mode = #tpu.pipeline_mode<synchronous>, transform_indices = @transform_8, window_bounds = array<i64: 16, 1>}, {pipeline_mode = #tpu.pipeline_mode<synchronous>, transform_indices = @transform_9, window_bounds = array<i64: 16, 1>}, {pipeline_mode = #tpu.pipeline_mode<synchronous>, transform_indices = @transform_10, window_bounds = array<i64: 16, 4>}, {pipeline_mode = #tpu.pipeline_mode<synchronous>, transform_indices = @transform_11, window_bounds = array<i64: 16, 1>}, {pipeline_mode = #tpu.pipeline_mode<synchronous>, transform_indices = @transform_12, window_bounds = array<i64: 16, 1>}, {pipeline_mode = #tpu.pipeline_mode<synchronous>, transform_indices = @transform_13, window_bounds = array<i64: 2, 256>}, {transform_indices = @transform_14, window_bounds = array<i64: 1, 16, 256>}]} {
    %c0 = arith.constant 0 : index
    %c0_0 = arith.constant 0 : index
    %c0_1 = arith.constant 0 : index
    %0 = vector.load %arg1[%c0, %c0_0, %c0_1] : memref<1x4x256xbf16, #tpu.memory_space<vmem>>, vector<1x4x256xbf16>
    %1 = vector.shape_cast %0 : vector<1x4x256xbf16> to vector<4x256xbf16>
    %c0_2 = arith.constant 0 : index
    %c0_3 = arith.constant 0 : index
    %2 = vector.load %arg11[%c0_2, %c0_3] : memref<16x4xbf16, #tpu.memory_space<vmem>>, vector<16x4xbf16>
    %cst = arith.constant dense<0.000000e+00> : vector<16x256xf32>
    %3 = tpu.matmul %2, %1, %cst {dimension_numbers = #tpu.dot_dimension_numbers<[1], [0], [0], [1], [0, 0, 1, 1], [], []>} : vector<16x4xbf16>, vector<4x256xbf16>, vector<16x256xf32> -> vector<16x256xf32>
    %c0_4 = arith.constant 0 : index
    %c0_5 = arith.constant 0 : index
    %4 = vector.load %arg12[%c0_4, %c0_5] : memref<16x1xf32, #tpu.memory_space<vmem>>, vector<16x1xf32>
    %5 = vector.broadcast %4 : vector<16x1xf32> to vector<16x256xf32>
    %6 = arith.mulf %3, %5 : vector<16x256xf32>
    %c0_6 = arith.constant 0 : index
    %c0_7 = arith.constant 0 : index
    %7 = vector.load %arg13[%c0_6, %c0_7] : memref<16x1xf32, #tpu.memory_space<vmem>>, vector<16x1xf32>
    %8 = vector.broadcast %7 : vector<16x1xf32> to vector<16x256xf32>
    %9 = arith.addf %6, %8 : vector<16x256xf32>
    %c0_8 = arith.constant 0 : index
    %c0_9 = arith.constant 0 : index
    %10 = vector.load %arg2[%c0_8, %c0_9] : memref<4x4xbf16, #tpu.memory_space<vmem>>, vector<4x4xbf16>
    %cst_10 = arith.constant dense<0.000000e+00> : vector<4x256xf32>
    %11 = tpu.matmul %10, %1, %cst_10 {dimension_numbers = #tpu.dot_dimension_numbers<[1], [0], [0], [1], [0, 0, 1, 1], [], []>} : vector<4x4xbf16>, vector<4x256xbf16>, vector<4x256xf32> -> vector<4x256xf32>
    %c0_11 = arith.constant 0 : index
    %c0_12 = arith.constant 0 : index
    %12 = vector.load %arg3[%c0_11, %c0_12] : memref<4x1xf32, #tpu.memory_space<vmem>>, vector<4x1xf32>
    %13 = vector.broadcast %12 : vector<4x1xf32> to vector<4x256xf32>
    %14 = arith.mulf %11, %13 : vector<4x256xf32>
    %c0_13 = arith.constant 0 : index
    %c0_14 = arith.constant 0 : index
    %15 = vector.load %arg4[%c0_13, %c0_14] : memref<4x1xf32, #tpu.memory_space<vmem>>, vector<4x1xf32>
    %16 = vector.broadcast %15 : vector<4x1xf32> to vector<4x256xf32>
    %17 = arith.addf %14, %16 : vector<4x256xf32>
    %cst_15 = arith.constant 0.000000e+00 : f32
    %18 = vector.broadcast %cst_15 : f32 to vector<4x256xf32>
    %19 = arith.maximumf %17, %18 : vector<4x256xf32>
    %cst_16 = arith.constant 0.000000e+00 : bf16
    %20 = vector.broadcast %cst_16 : bf16 to vector<4x17xbf16>
    %c0_17 = arith.constant 0 : index
    %c0_18 = arith.constant 0 : index
    %21 = vector.load %arg16[%c0_17, %c0_18] : memref<4x290xbf16, #tpu.memory_space<vmem>>, vector<4x17xbf16>
    tpu.vector_store %arg16[%c0_17, %c0_18], %20 {strides = array<i32>} : memref<4x290xbf16, #tpu.memory_space<vmem>>, vector<4x17xbf16>,
    %cst_19 = arith.constant 0.000000e+00 : bf16
    %22 = vector.broadcast %cst_19 : bf16 to vector<4x17xbf16>
    %c0_20 = arith.constant 0 : index
    %c273 = arith.constant 273 : index
    %23 = vector.load %arg16[%c0_20, %c273] : memref<4x290xbf16, #tpu.memory_space<vmem>>, vector<4x17xbf16>
    tpu.vector_store %arg16[%c0_20, %c273], %22 {strides = array<i32>} : memref<4x290xbf16, #tpu.memory_space<vmem>>, vector<4x17xbf16>,
    %24 = arith.truncf %19 : vector<4x256xf32> to vector<4x256xbf16>
    %c0_21 = arith.constant 0 : index
    %c17 = arith.constant 17 : index
    %25 = vector.load %arg16[%c0_21, %c17] : memref<4x290xbf16, #tpu.memory_space<vmem>>, vector<4x256xbf16>
    tpu.vector_store %arg16[%c0_21, %c17], %24 {strides = array<i32>} : memref<4x290xbf16, #tpu.memory_space<vmem>>, vector<4x256xbf16>,
    %c0_22 = arith.constant 0 : index
    %c0_23 = arith.constant 0 : index
    %26 = vector.load %arg14[%c0_22, %c0_23] : memref<2x256xbf16, #tpu.memory_space<vmem>>, vector<1x256xbf16>
    %c1 = arith.constant 1 : index
    %c0_24 = arith.constant 0 : index
    %27 = vector.load %arg14[%c1, %c0_24] : memref<2x256xbf16, #tpu.memory_space<vmem>>, vector<1x256xbf16>
    %cst_25 = arith.constant 0.000000e+00 : f32
    %28 = vector.broadcast %cst_25 : f32 to vector<4x256xf32>
    %c0_26 = arith.constant 0 : index
    %c0_27 = arith.constant 0 : index
    %29 = vector.load %arg16[%c0_26, %c0_27] : memref<4x290xbf16, #tpu.memory_space<vmem>>, vector<4x256xbf16>
    %30 = vector.broadcast %26 : vector<1x256xbf16> to vector<4x256xbf16>
    %31 = arith.mulf %29, %30 : vector<4x256xbf16>
    %c0_28 = arith.constant 0 : index
    %c0_29 = arith.constant 0 : index
    %c0_30 = arith.constant 0 : index
    %32 = vector.load %arg5[%c0_28, %c0_29, %c0_30] : memref<9x4x4xbf16, #tpu.memory_space<vmem>>, vector<1x4x4xbf16>
    %33 = vector.shape_cast %32 : vector<1x4x4xbf16> to vector<4x4xbf16>
    %cst_31 = arith.constant dense<0.000000e+00> : vector<4x256xf32>
    %34 = tpu.matmul %33, %31, %cst_31 {dimension_numbers = #tpu.dot_dimension_numbers<[1], [0], [0], [1], [0, 0, 1, 1], [], []>} : vector<4x4xbf16>, vector<4x256xbf16>, vector<4x256xf32> -> vector<4x256xf32>
    %35 = arith.addf %28, %34 : vector<4x256xf32>
    %c0_32 = arith.constant 0 : index
    %c1_33 = arith.constant 1 : index
    %36 = vector.load %arg16[%c0_32, %c1_33] : memref<4x290xbf16, #tpu.memory_space<vmem>>, vector<4x256xbf16>
    %c1_34 = arith.constant 1 : index
    %c0_35 = arith.constant 0 : index
    %c0_36 = arith.constant 0 : index
    %37 = vector.load %arg5[%c1_34, %c0_35, %c0_36] : memref<9x4x4xbf16, #tpu.memory_space<vmem>>, vector<1x4x4xbf16>
    %38 = vector.shape_cast %37 : vector<1x4x4xbf16> to vector<4x4xbf16>
    %cst_37 = arith.constant dense<0.000000e+00> : vector<4x256xf32>
    %39 = tpu.matmul %38, %36, %cst_37 {dimension_numbers = #tpu.dot_dimension_numbers<[1], [0], [0], [1], [0, 0, 1, 1], [], []>} : vector<4x4xbf16>, vector<4x256xbf16>, vector<4x256xf32> -> vector<4x256xf32>
    %40 = arith.addf %35, %39 : vector<4x256xf32>
    %c0_38 = arith.constant 0 : index
    %c2 = arith.constant 2 : index
    %41 = vector.load %arg16[%c0_38, %c2] : memref<4x290xbf16, #tpu.memory_space<vmem>>, vector<4x256xbf16>
    %42 = vector.broadcast %27 : vector<1x256xbf16> to vector<4x256xbf16>
    %43 = arith.mulf %41, %42 : vector<4x256xbf16>
    %c2_39 = arith.constant 2 : index
    %c0_40 = arith.constant 0 : index
    %c0_41 = arith.constant 0 : index
    %44 = vector.load %arg5[%c2_39, %c0_40, %c0_41] : memref<9x4x4xbf16, #tpu.memory_space<vmem>>, vector<1x4x4xbf16>
    %45 = vector.shape_cast %44 : vector<1x4x4xbf16> to vector<4x4xbf16>
    %cst_42 = arith.constant dense<0.000000e+00> : vector<4x256xf32>
    %46 = tpu.matmul %45, %43, %cst_42 {dimension_numbers = #tpu.dot_dimension_numbers<[1], [0], [0], [1], [0, 0, 1, 1], [], []>} : vector<4x4xbf16>, vector<4x256xbf16>, vector<4x256xf32> -> vector<4x256xf32>
    %47 = arith.addf %40, %46 : vector<4x256xf32>
    %c0_43 = arith.constant 0 : index
    %c16 = arith.constant 16 : index
    %48 = vector.load %arg16[%c0_43, %c16] : memref<4x290xbf16, #tpu.memory_space<vmem>>, vector<4x256xbf16>
    %49 = vector.broadcast %26 : vector<1x256xbf16> to vector<4x256xbf16>
    %50 = arith.mulf %48, %49 : vector<4x256xbf16>
    %c3 = arith.constant 3 : index
    %c0_44 = arith.constant 0 : index
    %c0_45 = arith.constant 0 : index
    %51 = vector.load %arg5[%c3, %c0_44, %c0_45] : memref<9x4x4xbf16, #tpu.memory_space<vmem>>, vector<1x4x4xbf16>
    %52 = vector.shape_cast %51 : vector<1x4x4xbf16> to vector<4x4xbf16>
    %cst_46 = arith.constant dense<0.000000e+00> : vector<4x256xf32>
    %53 = tpu.matmul %52, %50, %cst_46 {dimension_numbers = #tpu.dot_dimension_numbers<[1], [0], [0], [1], [0, 0, 1, 1], [], []>} : vector<4x4xbf16>, vector<4x256xbf16>, vector<4x256xf32> -> vector<4x256xf32>
    %54 = arith.addf %47, %53 : vector<4x256xf32>
    %c0_47 = arith.constant 0 : index
    %c17_48 = arith.constant 17 : index
    %55 = vector.load %arg16[%c0_47, %c17_48] : memref<4x290xbf16, #tpu.memory_space<vmem>>, vector<4x256xbf16>
    %c4 = arith.constant 4 : index
    %c0_49 = arith.constant 0 : index
    %c0_50 = arith.constant 0 : index
    %56 = vector.load %arg5[%c4, %c0_49, %c0_50] : memref<9x4x4xbf16, #tpu.memory_space<vmem>>, vector<1x4x4xbf16>
    %57 = vector.shape_cast %56 : vector<1x4x4xbf16> to vector<4x4xbf16>
    %cst_51 = arith.constant dense<0.000000e+00> : vector<4x256xf32>
    %58 = tpu.matmul %57, %55, %cst_51 {dimension_numbers = #tpu.dot_dimension_numbers<[1], [0], [0], [1], [0, 0, 1, 1], [], []>} : vector<4x4xbf16>, vector<4x256xbf16>, vector<4x256xf32> -> vector<4x256xf32>
    %59 = arith.addf %54, %58 : vector<4x256xf32>
    %c0_52 = arith.constant 0 : index
    %c18 = arith.constant 18 : index
    %60 = vector.load %arg16[%c0_52, %c18] : memref<4x290xbf16, #tpu.memory_space<vmem>>, vector<4x256xbf16>
    %61 = vector.broadcast %27 : vector<1x256xbf16> to vector<4x256xbf16>
    %62 = arith.mulf %60, %61 : vector<4x256xbf16>
    %c5 = arith.constant 5 : index
    %c0_53 = arith.constant 0 : index
    %c0_54 = arith.constant 0 : index
    %63 = vector.load %arg5[%c5, %c0_53, %c0_54] : memref<9x4x4xbf16, #tpu.memory_space<vmem>>, vector<1x4x4xbf16>
    %64 = vector.shape_cast %63 : vector<1x4x4xbf16> to vector<4x4xbf16>
    %cst_55 = arith.constant dense<0.000000e+00> : vector<4x256xf32>
    %65 = tpu.matmul %64, %62, %cst_55 {dimension_numbers = #tpu.dot_dimension_numbers<[1], [0], [0], [1], [0, 0, 1, 1], [], []>} : vector<4x4xbf16>, vector<4x256xbf16>, vector<4x256xf32> -> vector<4x256xf32>
    %66 = arith.addf %59, %65 : vector<4x256xf32>
    %c0_56 = arith.constant 0 : index
    %c32 = arith.constant 32 : index
    %67 = vector.load %arg16[%c0_56, %c32] : memref<4x290xbf16, #tpu.memory_space<vmem>>, vector<4x256xbf16>
    %68 = vector.broadcast %26 : vector<1x256xbf16> to vector<4x256xbf16>
    %69 = arith.mulf %67, %68 : vector<4x256xbf16>
    %c6 = arith.constant 6 : index
    %c0_57 = arith.constant 0 : index
    %c0_58 = arith.constant 0 : index
    %70 = vector.load %arg5[%c6, %c0_57, %c0_58] : memref<9x4x4xbf16, #tpu.memory_space<vmem>>, vector<1x4x4xbf16>
    %71 = vector.shape_cast %70 : vector<1x4x4xbf16> to vector<4x4xbf16>
    %cst_59 = arith.constant dense<0.000000e+00> : vector<4x256xf32>
    %72 = tpu.matmul %71, %69, %cst_59 {dimension_numbers = #tpu.dot_dimension_numbers<[1], [0], [0], [1], [0, 0, 1, 1], [], []>} : vector<4x4xbf16>, vector<4x256xbf16>, vector<4x256xf32> -> vector<4x256xf32>
    %73 = arith.addf %66, %72 : vector<4x256xf32>
    %c0_60 = arith.constant 0 : index
    %c33 = arith.constant 33 : index
    %74 = vector.load %arg16[%c0_60, %c33] : memref<4x290xbf16, #tpu.memory_space<vmem>>, vector<4x256xbf16>
    %c7 = arith.constant 7 : index
    %c0_61 = arith.constant 0 : index
    %c0_62 = arith.constant 0 : index
    %75 = vector.load %arg5[%c7, %c0_61, %c0_62] : memref<9x4x4xbf16, #tpu.memory_space<vmem>>, vector<1x4x4xbf16>
    %76 = vector.shape_cast %75 : vector<1x4x4xbf16> to vector<4x4xbf16>
    %cst_63 = arith.constant dense<0.000000e+00> : vector<4x256xf32>
    %77 = tpu.matmul %76, %74, %cst_63 {dimension_numbers = #tpu.dot_dimension_numbers<[1], [0], [0], [1], [0, 0, 1, 1], [], []>} : vector<4x4xbf16>, vector<4x256xbf16>, vector<4x256xf32> -> vector<4x256xf32>
    %78 = arith.addf %73, %77 : vector<4x256xf32>
    %c0_64 = arith.constant 0 : index
    %c34 = arith.constant 34 : index
    %79 = vector.load %arg16[%c0_64, %c34] : memref<4x290xbf16, #tpu.memory_space<vmem>>, vector<4x256xbf16>
    %80 = vector.broadcast %27 : vector<1x256xbf16> to vector<4x256xbf16>
    %81 = arith.mulf %79, %80 : vector<4x256xbf16>
    %c8 = arith.constant 8 : index
    %c0_65 = arith.constant 0 : index
    %c0_66 = arith.constant 0 : index
    %82 = vector.load %arg5[%c8, %c0_65, %c0_66] : memref<9x4x4xbf16, #tpu.memory_space<vmem>>, vector<1x4x4xbf16>
    %83 = vector.shape_cast %82 : vector<1x4x4xbf16> to vector<4x4xbf16>
    %cst_67 = arith.constant dense<0.000000e+00> : vector<4x256xf32>
    %84 = tpu.matmul %83, %81, %cst_67 {dimension_numbers = #tpu.dot_dimension_numbers<[1], [0], [0], [1], [0, 0, 1, 1], [], []>} : vector<4x4xbf16>, vector<4x256xbf16>, vector<4x256xf32> -> vector<4x256xf32>
    %85 = arith.addf %78, %84 : vector<4x256xf32>
    %c0_68 = arith.constant 0 : index
    %c0_69 = arith.constant 0 : index
    %86 = vector.load %arg6[%c0_68, %c0_69] : memref<4x1xf32, #tpu.memory_space<vmem>>, vector<4x1xf32>
    %87 = vector.broadcast %86 : vector<4x1xf32> to vector<4x256xf32>
    %88 = arith.mulf %85, %87 : vector<4x256xf32>
    %c0_70 = arith.constant 0 : index
    %c0_71 = arith.constant 0 : index
    %89 = vector.load %arg7[%c0_70, %c0_71] : memref<4x1xf32, #tpu.memory_space<vmem>>, vector<4x1xf32>
    %90 = vector.broadcast %89 : vector<4x1xf32> to vector<4x256xf32>
    %91 = arith.addf %88, %90 : vector<4x256xf32>
    %cst_72 = arith.constant 0.000000e+00 : f32
    %92 = vector.broadcast %cst_72 : f32 to vector<4x256xf32>
    %93 = arith.maximumf %91, %92 : vector<4x256xf32>
    %c0_73 = arith.constant 0 : index
    %c0_74 = arith.constant 0 : index
    %94 = vector.load %arg8[%c0_73, %c0_74] : memref<16x4xbf16, #tpu.memory_space<vmem>>, vector<16x4xbf16>
    %95 = arith.truncf %93 : vector<4x256xf32> to vector<4x256xbf16>
    %cst_75 = arith.constant dense<0.000000e+00> : vector<16x256xf32>
    %96 = tpu.matmul %94, %95, %cst_75 {dimension_numbers = #tpu.dot_dimension_numbers<[1], [0], [0], [1], [0, 0, 1, 1], [], []>} : vector<16x4xbf16>, vector<4x256xbf16>, vector<16x256xf32> -> vector<16x256xf32>
    %c0_76 = arith.constant 0 : index
    %c0_77 = arith.constant 0 : index
    %97 = vector.load %arg9[%c0_76, %c0_77] : memref<16x1xf32, #tpu.memory_space<vmem>>, vector<16x1xf32>
    %98 = vector.broadcast %97 : vector<16x1xf32> to vector<16x256xf32>
    %99 = arith.mulf %96, %98 : vector<16x256xf32>
    %c0_78 = arith.constant 0 : index
    %c0_79 = arith.constant 0 : index
    %100 = vector.load %arg10[%c0_78, %c0_79] : memref<16x1xf32, #tpu.memory_space<vmem>>, vector<16x1xf32>
    %101 = vector.broadcast %100 : vector<16x1xf32> to vector<16x256xf32>
    %102 = arith.addf %99, %101 : vector<16x256xf32>
    %103 = arith.addf %102, %9 : vector<16x256xf32>
    %cst_80 = arith.constant 0.000000e+00 : f32
    %104 = vector.broadcast %cst_80 : f32 to vector<16x256xf32>
    %105 = arith.maximumf %103, %104 : vector<16x256xf32>
    %c0_81 = arith.constant 0 : index
    %c0_82 = arith.constant 0 : index
    %c0_83 = arith.constant 0 : index
    %106 = vector.load %arg15[%c0_81, %c0_82, %c0_83] : memref<1x16x256xf32, #tpu.memory_space<vmem>>, vector<1x16x256xf32>
    %107 = vector.shape_cast %106 : vector<1x16x256xf32> to vector<16x256xf32>
    %108 = vector.shape_cast %105 : vector<16x256xf32> to vector<1x16x256xf32>
    tpu.vector_store %arg15[%c0_81, %c0_82, %c0_83], %108 {strides = array<i32>} : memref<1x16x256xf32, #tpu.memory_space<vmem>>, vector<1x16x256xf32>,
    return
  }
  func.func @transform_0(%arg0: i32) -> (i32, i32, i32) {
    %c0_i32 = arith.constant 0 : i32
    %c0_i32_0 = arith.constant 0 : i32
    %c0_i32_1 = arith.constant 0 : i32
    return %arg0, %c0_i32, %c0_i32_0 : i32, i32, i32
  }
  func.func @transform_1(%arg0: i32) -> (i32, i32) {
    %c0_i32 = arith.constant 0 : i32
    %c0_i32_0 = arith.constant 0 : i32
    %c0_i32_1 = arith.constant 0 : i32
    return %c0_i32, %c0_i32_0 : i32, i32
  }
  func.func @transform_2(%arg0: i32) -> (i32, i32) {
    %c0_i32 = arith.constant 0 : i32
    %c0_i32_0 = arith.constant 0 : i32
    %c0_i32_1 = arith.constant 0 : i32
    return %c0_i32, %c0_i32_0 : i32, i32
  }
  func.func @transform_3(%arg0: i32) -> (i32, i32) {
    %c0_i32 = arith.constant 0 : i32
    %c0_i32_0 = arith.constant 0 : i32
    %c0_i32_1 = arith.constant 0 : i32
    return %c0_i32, %c0_i32_0 : i32, i32
  }
  func.func @transform_4(%arg0: i32) -> (i32, i32, i32) {
    %c0_i32 = arith.constant 0 : i32
    %c0_i32_0 = arith.constant 0 : i32
    %c0_i32_1 = arith.constant 0 : i32
    %c0_i32_2 = arith.constant 0 : i32
    return %c0_i32, %c0_i32_0, %c0_i32_1 : i32, i32, i32
  }
  func.func @transform_5(%arg0: i32) -> (i32, i32) {
    %c0_i32 = arith.constant 0 : i32
    %c0_i32_0 = arith.constant 0 : i32
    %c0_i32_1 = arith.constant 0 : i32
    return %c0_i32, %c0_i32_0 : i32, i32
  }
  func.func @transform_6(%arg0: i32) -> (i32, i32) {
    %c0_i32 = arith.constant 0 : i32
    %c0_i32_0 = arith.constant 0 : i32
    %c0_i32_1 = arith.constant 0 : i32
    return %c0_i32, %c0_i32_0 : i32, i32
  }
  func.func @transform_7(%arg0: i32) -> (i32, i32) {
    %c0_i32 = arith.constant 0 : i32
    %c0_i32_0 = arith.constant 0 : i32
    %c0_i32_1 = arith.constant 0 : i32
    return %c0_i32, %c0_i32_0 : i32, i32
  }
  func.func @transform_8(%arg0: i32) -> (i32, i32) {
    %c0_i32 = arith.constant 0 : i32
    %c0_i32_0 = arith.constant 0 : i32
    %c0_i32_1 = arith.constant 0 : i32
    return %c0_i32, %c0_i32_0 : i32, i32
  }
  func.func @transform_9(%arg0: i32) -> (i32, i32) {
    %c0_i32 = arith.constant 0 : i32
    %c0_i32_0 = arith.constant 0 : i32
    %c0_i32_1 = arith.constant 0 : i32
    return %c0_i32, %c0_i32_0 : i32, i32
  }
  func.func @transform_10(%arg0: i32) -> (i32, i32) {
    %c0_i32 = arith.constant 0 : i32
    %c0_i32_0 = arith.constant 0 : i32
    %c0_i32_1 = arith.constant 0 : i32
    return %c0_i32, %c0_i32_0 : i32, i32
  }
  func.func @transform_11(%arg0: i32) -> (i32, i32) {
    %c0_i32 = arith.constant 0 : i32
    %c0_i32_0 = arith.constant 0 : i32
    %c0_i32_1 = arith.constant 0 : i32
    return %c0_i32, %c0_i32_0 : i32, i32
  }
  func.func @transform_12(%arg0: i32) -> (i32, i32) {
    %c0_i32 = arith.constant 0 : i32
    %c0_i32_0 = arith.constant 0 : i32
    %c0_i32_1 = arith.constant 0 : i32
    return %c0_i32, %c0_i32_0 : i32, i32
  }
  func.func @transform_13(%arg0: i32) -> (i32, i32) {
    %c0_i32 = arith.constant 0 : i32
    %c0_i32_0 = arith.constant 0 : i32
    %c0_i32_1 = arith.constant 0 : i32
    return %c0_i32, %c0_i32_0 : i32, i32
  }
  func.func @transform_14(%arg0: i32) -> (i32, i32, i32) {
    %c0_i32 = arith.constant 0 : i32
    %c0_i32_0 = arith.constant 0 : i32
    %c0_i32_1 = arith.constant 0 : i32
    return %arg0, %c0_i32, %c0_i32_0 : i32, i32, i32
  }
}

</mosaic_0001>

<bundles_post_ra>
// kernel: bottleneck_forward.1
= control target key start
LH: loop header
LB: loop body
LE: loop exit
PB: predicated region body
PF: predicated region fallthrough
CT: control target
= control target key end

     0   :  { %s1607_s29 = smov 0   ;;  %s1786_s0 = inlined_call_operand.vmem [shape: bf16[2,4,256], index: 0, kind: input, shape index: {}]   ;;  %s1787_s1 = inlined_call_operand.vmem [shape: bf16[4,4], index: 1, kind: input, shape index: {}]   ;;  %s1788_s2 = inlined_call_operand.vmem [shape: f32[4,1], index: 2, kind: input, shape index: {}]   ;;  %s1789_s3 = inlined_call_operand.vmem [shape: f32[4,1], index: 3, kind: input, shape index: {}]   ;;  %s1790_s4 = inlined_call_operand.vmem [shape: bf16[9,4,4], index: 4, kind: input, shape index: {}]   ;;  %s1791_s5 = inlined_call_operand.vmem [shape: f32[4,1], index: 5, kind: input, shape index: {}]   ;;  %s1792_s6 = inlined_call_operand.vmem [shape: f32[4,1], index: 6, kind: input, shape index: {}]   ;;  %s1793_s7 = inlined_call_operand.vmem [shape: bf16[16,4], index: 7, kind: input, shape index: {}]   ;;  %s1794_s8 = inlined_call_operand.vmem [shape: f32[16,1], index: 8, kind: input, shape index: {}]   ;;  %s1795_s9 = inlined_call_operand.vmem [shape: f32[16,1], index: 9, kind: input, shape index: {}]   ;;  %s1796_s10 = inlined_call_operand.vmem [shape: bf16[16,4], index: 10, kind: input, shape index: {}]   ;;  %s1797_s11 = inlined_call_operand.vmem [shape: f32[16,1], index: 11, kind: input, shape index: {}]   ;;  %s1798_s12 = inlined_call_operand.vmem [shape: f32[16,1], index: 12, kind: input, shape index: {}]   ;;  %s1799_s13 = inlined_call_operand.vmem [shape: bf16[2,256], index: 13, kind: input, shape index: {}]   ;;  %s1800_s14 = inlined_call_operand.vmem [shape: f32[2,16,256], index: 14, kind: output, shape index: {}]  }
   0x1 LB: > { %s1428_s30 = sadd.s32 4294967295, %s1515_s29   ;;  %p1432_p0 = scmp.ge.s32.totalorder %s1515_s29, 1  ;;  %s1515_s29 = sphi %s1607_s29, %s24_s29  }
   0x2   : > { %p412_p1 = scmp.lt.s32.totalorder %s1515_s29, 3 }
   0x4   : > { %p413_p2 = pnand %p1432_p0, %p412_p1 }
   0x5   : > { %p458_p3 = scmp.lt.s32.totalorder (!%p413_p2), %s1428_s30, 1  ;;  %s1518_s27 = smov (!%p413_p2), 32  }
   0x6   : > { %416 = sbr.rel (%p413_p2) target bundleno = 936 (0x3a8), region = 76  ;;  %s1519_s28 = smov (!%p413_p2), 16  }
   0x7   : > { %s1520_s15 = smov (!%p413_p2), 17   ;;  %s1521_s16 = smov (!%p413_p2), 127  }
   0x8   : > { %s1523_s18 = smov (!%p413_p2), 2   ;;  %s1524_s19 = smov (!%p413_p2), 34  }
   0x9   : > { %s1526_s21 = smov (!%p413_p2), 112   ;;  %s1527_s22 = smov (!%p413_p2), 111  }
   0xa   : > { %s1528_s25 = smov (!%p413_p2), 110   ;;  %s1529_s26 = smov (!%p413_p2), 96  }
   0xb   : > { %v1517_v0 = vmov 0   ;;  %v587_v1 = vld [vmem:[%s1788_s2] sm:$0xf]  ;;  %s1802_s30 = smov (!%p458_p3, %s1428_s30), 1  ;;  %vm485_vm0 = vcmask 1041408   ;;  %vm481_vm1 = vcmask 31744  }
   0xc   : > { %1506 = vset.pattern.permute.xlu0 %v1517_v0  ;;  %1507 = vset.pattern.permute.xlu2 %v1517_v0  ;;  %s1479_s17 = sshll.u32 %s1802_s30, 2  ;;  %v595_v3 = vld [vmem:[%s1789_s3] sm:$0xf]  ;;  %vm605_vm2 = vcmask 132096   ;;  %vm607_vm3 = vcmask 271496   ;;  %vm646_vm4 = vcmask 1043456  }
   0xd   : > { %590 = vperm.xlu0 %1506, %v587_v1   ;;  %1508 = vset.pattern.permute.xlu1 %v1517_v0  ;;  %s462_s20 = scalar_lea.vmem %s1786_s0, %s1479_s17  ;;  %v550_v10 = vld [vmem:[%s1787_s1] sm:$0x3]  ;;  %606 = vst.msk [vmem:[#allocation2] sm:$0x3] %vm605_vm2, %v1517_v0  ;;  %vm622_vm5 = vcmask 1041544   ;;  %vm623_vm6 = vcmask 1043458  }
   0xe   : > { %v469_v2 = vld [vmem:[%s462_s20] sm:$0xf]  ;;  %608 = vst.msk [vmem:[#allocation2 + $0x4] sm:$0x3] %vm607_vm3, %v1517_v0  ;;  %vm624_vm7 = vmor %vm623_vm6, %vm622_vm5  ;;  %vm625_vm8 = vcmask 136196   ;;  %vm619_vm9 = vcmask 138240  }
   0xf   : > { %478 = vst [vmem:[#allocation1] ss:$4 sm:$0xff] %v469_v2  ;;  %v1641_v11 = vld [vmem:[%s1799_s13] sm:$0x3]  ;;  %vm626_vm10 = vmor %vm625_vm8, %vm624_vm7  ;;  %s1522_s17 = smov 18   ;;  %vm676_vm11 = vcmask 1039360  }
  0x10   : > { %vm772_vm12 = vcmask 15360   ;;  %vm849_vm13 = vcmask 130048   ;;  %s1525_s20 = smov 126   ;;  %vm983_vm14 = vcmask 146432   ;;  %vm1060_vm15 = vcmask 261120  }
  0x11   : > { %vm1194_vm2 = vcmask 277504   ;;  %vm803_vm3 = vcmask 1031168   ;;  %vm937_vm5 = vcmask 908288   ;;  %vm1014_vm6 = vcmask 900096  }
  0x12   : > { %vm1091_vm7 = vcmask 785408   ;;  %vm1148_vm8 = vcmask 777216  }
  0x15   : > { %598 = vperm.xlu0 %1506, %v595_v3  }
  0x16   : > { %v1627_v4 = vld.sshfl [vmem:[#allocation1] sm:$0xff pattern:$0x73625140]  ;;  %v1629_v5 = vld.sshfl [vmem:[#allocation1 + $0x8] sm:$0xff pattern:$0x73625140] }
  0x17   : > { %551 = vst [vmem:[#allocation1] ss:$4 sm:$0xff] %v469_v2  ;;  %v488_v1 = vsel %vm485_vm0, %v1629_v5, 0 }
  0x18   : > { %511 = vmatpush.bf16.msra.mxu1 %v488_v1 }
  0x1e   : > { %v552_v6 = vld.sshfl [vmem:[#allocation1] sm:$0xff pattern:$0x73625140]  ;;  %v553_v7 = vld.sshfl [vmem:[#allocation1 + $0x8] sm:$0xff pattern:$0x73625140] }
  0x1f   : > { %v557_v8 = vsel %vm485_vm0, %v552_v6, 0  ;;  %v559_v9 = vsel %vm485_vm0, %v553_v7, 0  ;;  %631 = vst [vmem:[#allocation1] ss:$9 sm:$0xff] %v1641_v11  ;;  %v486_v7 = vsel %vm485_vm0, %v1627_v4, 0 }
  0x20   : > { %568 = vmatpush.bf16.msra.mxu2 %v557_v8  ;;  %581 = vmatpush.bf16.msra.mxu3 %v559_v9 }
  0x21   : > { %497 = vmatpush.bf16.msra.mxu0 %v486_v7 }
  0x23   : > { %1443 = vmatmul.msk.bf16.vlgmr.msra.gmra.mxu2 %vm481_vm1, %v550_v10  ;;  %1444 = vmatmul.msk.bf16.vlgmr.msra.gmra.mxu3 %vm481_vm1, %v550_v10 }
  0x26   : > { %v632_v12 = vld [vmem:[#allocation1] sm:$0xff]  ;;  %v633_v13 = vld [vmem:[#allocation1 + $0x9] sm:$0xff] }
  0x27   : > { %v634_v14 = vpack.i.b16 %v632_v12, %v632_v12  ;;  %v637_v15 = vpack.i.b16 %v633_v13, %v633_v13 }
  0x29   : > { %v636_v16 = vperm.slane %v634_v14, 0  ;;  %v639_v17 = vperm.slane %v637_v15, 0 }
  0x2b   : > { %v641_v18 = vunpack.c.l.bf16 %v636_v16  ;;  %v642_v19 = vunpack.c.l.bf16 %v639_v17 }
  0x2d   : > { %v645_v20 = vrot.slane %v642_v19, 4 }
  0x2f   : > { %v647_v21 = vsel %vm646_vm4, %v641_v18, %v645_v20 }
  0x30   : > { %1057 = vrot.lane.b32.xlu0 %v647_v21, %s1518_s27  ;;  %846 = vrot.lane.b32.xlu2 %v647_v21, %s1519_s28  ;;  %s1530_s27 = smov 95   ;;  %s1531_s28 = smov 94  }
  0x7f   : > { %v591_v22 = vpop.permute.xlu0 %590 }
  0x87   : > { %v599_v27 = vpop.permute.xlu0 %598 }
  0x8a   : > { %v847_v2 = vpop.permute.xlu2 %846 }
  0x8b   : > { %v848_v4 = vrot.slane %v847_v2, 4 }
  0xa2   : > { %v1652_v3 = vpop.permute.xlu0 %1057 }
  0xa6   : > { %v570_v23 = vpop.f32.mrf.mxu2  ;;  %v583_v24 = vpop.f32.mrf.mxu3 }
  0xa7   : > { %v593_v25 = vmul.f32 %v591_v22, %v570_v23  ;;  %v594_v26 = vmul.f32 %v591_v22, %v583_v24  ;;  %v850_v24 = vsel %vm849_vm13, %v848_v4, %v847_v2 }
  0xa9   : > { %v601_v28 = vadd.f32 %v599_v27, %v593_v25  ;;  %v602_v29 = vadd.f32 %v599_v27, %v594_v26 }
  0xab   : > { %v603_v30 = vmax.f32 %v601_v28, 0.0  ;;  %v604_v31 = vmax.f32 %v602_v29, 0.0 }
  0xad   : > { %v609_v32 = vpack.c.bf16 %v604_v31, %v603_v30 }
  0xae   : > { %v572_v33 = vpop.f32.mrf.mxu2  ;;  %v585_v34 = vpop.f32.mrf.mxu3 }
  0xaf   : > { %v611_v35 = vrot.slane %v609_v32, 2 }
  0xb1   : > { %v614_v36 = vsel %vm485_vm0, %v609_v32, %v611_v35 }
  0xb2   : > { %616 = vrot.lane.b32.xlu1 %v614_v36, %s1520_s15 }
 0x124   : > { %v617_v37 = vpop.permute.xlu1 %616 }
 0x125   : > { %v618_v38 = vrot.slane %v617_v37, 6 }
 0x127   : > { %v620_v39 = vsel %vm619_vm9, %v618_v38, %v617_v37  ;;  %vm1225_vm9 = vcmask 769024  }
 0x128   : > { %627 = vst.msk [vmem:[#allocation2] sm:$0x3f] %vm626_vm10, %v620_v39 }
 0x12f   : > { %v629_v40 = vld [vmem:[#allocation2] sm:$0xf] }
 0x130   : > { %v640_v41 = vunpack.c.l.bf16 %v629_v40  ;;  %v659_v43 = vld [vmem:[#allocation2] sm:$0x3f] }
 0x131   : > { %v749_v12 = vld [vmem:[#allocation2] sm:$0x3f] }
 0x132   : > { %v649_v42 = vmul.f32 %v647_v21, %v640_v41  ;;  %v762_v13 = vunpack.c.h.bf16 %v749_v12  ;;  %v761_v15 = vunpack.c.l.bf16 %v749_v12  ;;  %v843_v18 = vld [vmem:[#allocation2] sm:$0x3f] }
 0x133   : > { %v845_v20 = vunpack.c.h.bf16 %v843_v18  ;;  %v844_v22 = vunpack.c.l.bf16 %v843_v18  ;;  %v920_v35 = vld [vmem:[#allocation2] sm:$0x3f] }
 0x134   : > { %651 = vst [vmem:[#allocation1] ss:$2 sm:$0xff] %v649_v42  ;;  %v977_v42 = vld [vmem:[#allocation2] sm:$0x3f] }
 0x135   : > { %v854_v26 = vmul.f32 %v848_v4, %v845_v20  ;;  %v853_v28 = vmul.f32 %v850_v24, %v844_v22  ;;  %v1188_v12 = vld [vmem:[#allocation2] sm:$0x3f] }
 0x13b   : > { %v652_v44 = vld.sshfl [vmem:[#allocation1] sm:$0xff pattern:$0x75316420]  ;;  %v653_v45 = vld.sshfl [vmem:[#allocation1 + $0x8] sm:$0xff pattern:$0x75316420] }
 0x13c   : > { %v656_v46 = vpack.c.bf16 %v652_v44, %v652_v44  ;;  %v657_v47 = vpack.c.bf16 %v653_v45, %v653_v45  ;;  %663 = vst [vmem:[#allocation1] ss:$4 sm:$0xff] %v659_v43  ;;  %v979_v43 = vunpack.c.h.bf16 %v977_v42  ;;  %v978_v45 = vunpack.c.l.bf16 %v977_v42  ;;  %v1450_v42 = vld [vmem:[%s1790_s4 + $0x4] sm:$0x3] }
 0x13e   : > { %v718_v48 = vsel %vm485_vm0, %v656_v46, 0  ;;  %v721_v49 = vsel %vm485_vm0, %v657_v47, 0  ;;  %v1054_v46 = vld [vmem:[#allocation2] sm:$0x3f] }
 0x13f   : > { %730 = vmatpush.bf16.msrb.mxu2 %v718_v48  ;;  %743 = vmatpush.bf16.msrb.mxu3 %v721_v49 }
 0x143   : > { %v668_v50 = vld.sshfl [vmem:[#allocation1 + $0x10] sm:$0xff pattern:$0x73625140]  ;;  %v664_v51 = vld.sshfl [vmem:[#allocation1] sm:$0xff pattern:$0x73625140] }
 0x144   : > { %674 = vrot.lane.b32.xlu0 %v668_v50, %s1521_s16  ;;  %v666_v52 = vld.sshfl [vmem:[#allocation1 + $0x8] sm:$0xff pattern:$0x73625140] }
 0x145   : > { %750 = vst [vmem:[#allocation1] ss:$9 sm:$0xff] %v1641_v11 }
 0x14c   : > { %v751_v53 = vld [vmem:[#allocation1] sm:$0xff]  ;;  %v752_v54 = vld [vmem:[#allocation1 + $0x9] sm:$0xff] }
 0x14d   : > { %v753_v55 = vshrl.u32 %v751_v53, 16  ;;  %v757_v56 = vshrl.u32 %v752_v54, 16  ;;  %v1056_v53 = vunpack.c.h.bf16 %v1054_v46  ;;  %v1055_v54 = vunpack.c.l.bf16 %v1054_v46 }
 0x14f   : > { %v754_v57 = vpack.i.b16 %v753_v55, %v753_v55  ;;  %v758_v58 = vpack.i.b16 %v757_v56, %v757_v56  ;;  %v1481_v56 = vld [vmem:[%s1796_s10] sm:$0xff] }
 0x150   : > { %1441 = vmatmul.msk.bf16.vlgmr.msra.gmra.mxu0 %vm481_vm1, %v1481_v56  ;;  %1442 = vmatmul.msk.bf16.vlgmr.msra.gmra.mxu1 %vm481_vm1, %v1481_v56 }
 0x151   : > { %v756_v59 = vperm.slane %v754_v57, 0  ;;  %v760_v60 = vperm.slane %v758_v58, 0 }
 0x153   : > { %v764_v61 = vunpack.c.l.bf16 %v760_v60  ;;  %v763_v62 = vunpack.c.l.bf16 %v756_v59 }
 0x155   : > { %v767_v63 = vrot.slane %v764_v61, 4 }
 0x157   : > { %v768_v0 = vsel %vm646_vm4, %v763_v62, %v767_v63  ;;  %vm880_vm4 = vcmask 916480  }
 0x158   : > { %980 = vrot.lane.b32.xlu2 %v768_v0, %s1522_s17  ;;  %769 = vrot.lane.b32.xlu1 %v768_v0, %s1523_s18 }
 0x160   : > { %672 = vrot.lane.b32.xlu2 %v666_v52, %s1521_s16  ;;  %670 = vrot.lane.b32.xlu1 %v664_v51, %s1521_s16  ;;  %v1059_v52 = vrot.slane %v1652_v3, 4 }
 0x162   : > { %v1061_v55 = vsel %vm1060_vm15, %v1059_v52, %v1652_v3  ;;  %v1065_v57 = vmul.f32 %v1059_v52, %v1056_v53  ;;  %v1131_v3 = vld [vmem:[#allocation2] sm:$0x3f] }
 0x163   : > { %v1064_v59 = vmul.f32 %v1061_v55, %v1055_v54 }
 0x168   : > { %1191 = vrot.lane.b32.xlu1 %v768_v0, %s1524_s19 }
 0x1b2   : > { %v1654_v6 = vpop.permute.xlu2 %980 }
 0x1b3   : > { %v982_v39 = vrot.slane %v1654_v6, 4 }
 0x1b5   : > { %v984_v44 = vsel %vm983_vm14, %v982_v39, %v1654_v6  ;;  %v988_v47 = vmul.f32 %v982_v39, %v979_v43 }
 0x1b6   : > { %v675_v8 = vpop.permute.xlu0 %674  ;;  %v987_v48 = vmul.f32 %v984_v44, %v978_v45 }
 0x1ba   : > { %v673_v9 = vpop.permute.xlu2 %672 }
 0x1bb   : > { %v678_v10 = vsel %vm676_vm11, %v673_v9, %v675_v8 }
 0x1bc   : > { %v686_v11 = vsel %vm485_vm0, %v678_v10, 0 }
 0x1bd   : > { %708 = vmatpush.bf16.msrb.mxu1 %v686_v11 }
 0x1ca   : > { %v770_v5 = vpop.permute.xlu1 %769 }
 0x1cb   : > { %v771_v14 = vrot.slane %v770_v5, 4 }
 0x1cd   : > { %v773_v16 = vsel %vm772_vm12, %v771_v14, %v770_v5  ;;  %v777_v17 = vmul.f32 %v771_v14, %v762_v13  ;;  %v1190_v5 = vunpack.c.h.bf16 %v1188_v12  ;;  %v1189_v14 = vunpack.c.l.bf16 %v1188_v12 }
 0x1ce   : > { %v776_v19 = vmul.f32 %v773_v16, %v761_v15 }
 0x1cf   : > { %782 = vst [vmem:[#allocation1 + $0x10] ss:$2 sm:$0xff] %v777_v17 }
 0x1d0   : > { %780 = vst [vmem:[#allocation1] ss:$2 sm:$0xff] %v776_v19 }
 0x1d2   : > { %v671_v21 = vpop.permute.xlu1 %670 }
 0x1d3   : > { %v677_v23 = vsel %vm676_vm11, %v671_v21, %v673_v9 }
 0x1d4   : > { %v683_v25 = vsel %vm485_vm0, %v677_v23, 0 }
 0x1d5   : > { %695 = vmatpush.bf16.msrb.mxu0 %v683_v25  ;;  %v1273_v25 = vld [vmem:[%s1792_s6] sm:$0xf] }
 0x1d6   : > { %v785_v27 = vld.sshfl [vmem:[#allocation1 + $0x10] sm:$0xff pattern:$0x75316420] }
 0x1d7   : > { %v791_v29 = vpack.c.bf16 %v785_v27, %v785_v27  ;;  %859 = vst [vmem:[#allocation1 + $0x10] ss:$2 sm:$0xff] %v854_v26  ;;  %v784_v30 = vld.sshfl [vmem:[#allocation1 + $0x8] sm:$0xff pattern:$0x75316420] }
 0x1d8   : > { %v790_v31 = vpack.c.bf16 %v784_v30, %v784_v30  ;;  %v783_v32 = vld.sshfl [vmem:[#allocation1] sm:$0xff pattern:$0x75316420]  ;;  %v519_v30 = vld [vmem:[%s1797_s11 + $0x8] sm:$0xff] }
 0x1d9   : > { %801 = vrot.lane.b32.xlu1 %v791_v29, %s1525_s20  ;;  %v789_v33 = vpack.c.bf16 %v783_v32, %v783_v32  ;;  %857 = vst [vmem:[#allocation1] ss:$2 sm:$0xff] %v853_v28  ;;  %v1265_v26 = vld [vmem:[%s1791_s5] sm:$0xf]  ;;  %v535_v32 = vld [vmem:[%s1798_s12 + $0x8] sm:$0xff] }
 0x1da   : > { %799 = vrot.lane.b32.xlu0 %v790_v31, %s1525_s20  ;;  %v1192_v1 = vpop.permute.xlu1 %1191  ;;  %v1445_v27 = vld [vmem:[%s1790_s4 + $0x2] sm:$0x3]  ;;  %v658_v28 = vld [vmem:[%s1790_s4] sm:$0x3] }
 0x1db   : > { %797 = vrot.lane.b32.xlu2 %v789_v33, %s1525_s20  ;;  %v1193_v9 = vrot.slane %v1192_v1, 4  ;;  %1446 = vmatmul.msk.bf16.vlgmr.msrb.gmra.mxu0 %vm481_vm1, %v1445_v27  ;;  %v1329_v29 = vld [vmem:[%s1794_s8] sm:$0xff] }
 0x1dc   : > { %1447 = vmatmul.msk.bf16.vlgmr.msrb.gmra.mxu1 %vm481_vm1, %v1445_v27  ;;  %1449 = vmatmul.msk.bf16.vlgmr.msrb.gmra.mxu3 %vm481_vm1, %v658_v28  ;;  %v518_v31 = vld [vmem:[%s1797_s11] sm:$0xff]  ;;  %v1751_v27 = vpop.f32.mrf.mxu0 }
 0x1dd   : > { %v1195_v13 = vsel %vm1194_vm2, %v1193_v9, %v1192_v1  ;;  %v1199_v15 = vmul.f32 %v1193_v9, %v1190_v5  ;;  %1448 = vmatmul.msk.bf16.vlgmr.msrb.gmra.mxu2 %vm481_vm1, %v658_v28  ;;  %v534_v33 = vld [vmem:[%s1798_s12] sm:$0xff]  ;;  %v1459_v1 = vld [vmem:[%s1790_s4 + $0xa] sm:$0x3]  ;;  %v1468_v28 = vld [vmem:[%s1790_s4 + $0x10] sm:$0x3] }
 0x1de   : > { %v862_v34 = vld.sshfl [vmem:[#allocation1 + $0x10] sm:$0xff pattern:$0x75316420]  ;;  %v1198_v16 = vmul.f32 %v1195_v13, %v1189_v14 }
 0x1df   : > { %v868_v36 = vpack.c.bf16 %v862_v34, %v862_v34 }
 0x1e0   : > { %v861_v37 = vld.sshfl [vmem:[#allocation1 + $0x8] sm:$0xff pattern:$0x75316420]  ;;  %v860_v38 = vld.sshfl [vmem:[#allocation1] sm:$0xff pattern:$0x75316420] }
 0x1e1   : > { %878 = vrot.lane.b32.xlu1 %v868_v36, %s1526_s21  ;;  %v867_v40 = vpack.c.bf16 %v861_v37, %v861_v37  ;;  %v866_v41 = vpack.c.bf16 %v860_v38, %v860_v38  ;;  %924 = vst [vmem:[#allocation1] ss:$4 sm:$0xff] %v920_v35 }
 0x1e3   : > { %876 = vrot.lane.b32.xlu0 %v867_v40, %s1526_s21  ;;  %874 = vrot.lane.b32.xlu2 %v866_v41, %s1526_s21 }
 0x1e8   : > { %v929_v49 = vld.sshfl [vmem:[#allocation1 + $0x10] sm:$0xff pattern:$0x73625140]  ;;  %v927_v50 = vld.sshfl [vmem:[#allocation1 + $0x8] sm:$0xff pattern:$0x73625140] }
 0x1e9   : > { %935 = vrot.lane.b32.xlu1 %v929_v49, %s1527_s22  ;;  %993 = vst [vmem:[#allocation1 + $0x10] ss:$2 sm:$0xff] %v988_v47  ;;  %v925_v51 = vld.sshfl [vmem:[#allocation1] sm:$0xff pattern:$0x73625140] }
 0x1ea   : > { %991 = vst [vmem:[#allocation1] ss:$2 sm:$0xff] %v987_v48 }
 0x1eb   : > { %933 = vrot.lane.b32.xlu0 %v927_v50, %s1527_s22  ;;  %931 = vrot.lane.b32.xlu2 %v925_v51, %s1527_s22  ;;  %v1453_v50 = vld [vmem:[%s1790_s4 + $0x6] sm:$0x3] }
 0x1f0   : > { %v996_v58 = vld.sshfl [vmem:[#allocation1 + $0x10] sm:$0xff pattern:$0x75316420] }
 0x1f1   : > { %v1002_v60 = vpack.c.bf16 %v996_v58, %v996_v58  ;;  %1070 = vst [vmem:[#allocation1 + $0x10] ss:$2 sm:$0xff] %v1065_v57  ;;  %v995_v61 = vld.sshfl [vmem:[#allocation1 + $0x8] sm:$0xff pattern:$0x75316420] }
 0x1f2   : > { %v1001_v62 = vpack.c.bf16 %v995_v61, %v995_v61  ;;  %v994_v63 = vld.sshfl [vmem:[#allocation1] sm:$0xff pattern:$0x75316420]  ;;  %v1456_v57 = vld [vmem:[%s1790_s4 + $0x8] sm:$0x3] }
 0x1f3   : > { %1012 = vrot.lane.b32.xlu1 %v1002_v60, %s1528_s25  ;;  %v1000_v0 = vpack.c.bf16 %v994_v63, %v994_v63  ;;  %1068 = vst [vmem:[#allocation1] ss:$2 sm:$0xff] %v1064_v59 }
 0x1f4   : > { %1010 = vrot.lane.b32.xlu0 %v1001_v62, %s1528_s25 }
 0x1f5   : > { %1008 = vrot.lane.b32.xlu2 %v1000_v0, %s1528_s25 }
 0x1f8   : > { %v1073_v2 = vld.sshfl [vmem:[#allocation1 + $0x10] sm:$0xff pattern:$0x75316420] }
 0x1f9   : > { %v1079_v6 = vpack.c.bf16 %v1073_v2, %v1073_v2 }
 0x1fa   : > { %v1072_v7 = vld.sshfl [vmem:[#allocation1 + $0x8] sm:$0xff pattern:$0x75316420]  ;;  %v1071_v8 = vld.sshfl [vmem:[#allocation1] sm:$0xff pattern:$0x75316420] }
 0x1fb   : > { %1089 = vrot.lane.b32.xlu1 %v1079_v6, %s1529_s26  ;;  %v1078_v10 = vpack.c.bf16 %v1072_v7, %v1072_v7  ;;  %v1077_v11 = vpack.c.bf16 %v1071_v8, %v1071_v8  ;;  %1135 = vst [vmem:[#allocation1] ss:$4 sm:$0xff] %v1131_v3 }
 0x1fd   : > { %1087 = vrot.lane.b32.xlu0 %v1078_v10, %s1529_s26  ;;  %1085 = vrot.lane.b32.xlu2 %v1077_v11, %s1529_s26  ;;  %v1462_v11 = vld [vmem:[%s1790_s4 + $0xc] sm:$0x3] }
 0x202   : > { %v1140_v17 = vld.sshfl [vmem:[#allocation1 + $0x10] sm:$0xff pattern:$0x73625140]  ;;  %v1138_v18 = vld.sshfl [vmem:[#allocation1 + $0x8] sm:$0xff pattern:$0x73625140] }
 0x203   : > { %1146 = vrot.lane.b32.xlu1 %v1140_v17, %s1530_s27  ;;  %1204 = vst [vmem:[#allocation1 + $0x10] ss:$2 sm:$0xff] %v1199_v15  ;;  %v1136_v19 = vld.sshfl [vmem:[#allocation1] sm:$0xff pattern:$0x73625140] }
 0x204   : > { %1202 = vst [vmem:[#allocation1] ss:$2 sm:$0xff] %v1198_v16 }
 0x205   : > { %1144 = vrot.lane.b32.xlu0 %v1138_v18, %s1530_s27  ;;  %1142 = vrot.lane.b32.xlu2 %v1136_v19, %s1530_s27  ;;  %v1346_v18 = vld [vmem:[%s1795_s9 + $0x8] sm:$0xff]  ;;  %s1480_s27 = sshll.u32 %s1802_s30, 5 }
 0x206   : > { %v1465_v19 = vld [vmem:[%s1790_s4 + $0xe] sm:$0x3]  ;;  %s467_s16 = scalar_lea.vmem %s1800_s14, %s1480_s27 }
 0x20a   : > { %v1207_v4 = vld.sshfl [vmem:[#allocation1 + $0x10] sm:$0xff pattern:$0x75316420] }
 0x20b   : > { %v1213_v20 = vpack.c.bf16 %v1207_v4, %v1207_v4  ;;  %v1206_v21 = vld.sshfl [vmem:[#allocation1 + $0x8] sm:$0xff pattern:$0x75316420]  ;;  %v1205_v22 = vld.sshfl [vmem:[#allocation1] sm:$0xff pattern:$0x75316420] }
 0x20c   : > { %v1212_v23 = vpack.c.bf16 %v1206_v21, %v1206_v21  ;;  %v1211_v24 = vpack.c.bf16 %v1205_v22, %v1205_v22 }
 0x20d   : > { %1223 = vrot.lane.b32.xlu1 %v1213_v20, %s1531_s28 }
 0x20e   : > { %1221 = vrot.lane.b32.xlu0 %v1212_v23, %s1531_s28  ;;  %1219 = vrot.lane.b32.xlu2 %v1211_v24, %s1531_s28 }
 0x215   : > { %522 = vperm.xlu1 %1508, %v518_v31  }
 0x216   : > { %1276 = vperm.xlu0 %1506, %v1273_v25   ;;  %1268 = vperm.xlu2 %1507, %v1265_v26   ;;  %v1749_v26 = vpop.f32.mrf.mxu1 }
 0x21e   : > { %1333 = vperm.xlu0 %1506, %v1329_v29   ;;  %527 = vperm.xlu2 %1507, %v519_v30   ;;  %v1758_v29 = vpop.f32.mrf.mxu1  ;;  %v1760_v30 = vpop.f32.mrf.mxu0 }
 0x226   : > { %543 = vperm.xlu0 %1506, %v535_v32   ;;  %538 = vperm.xlu2 %1507, %v534_v33  }
 0x22e   : > { %1354 = vperm.xlu2 %1507, %v1346_v18  }
 0x235   : > { %v798_v34 = vpop.permute.xlu2 %797 }
 0x23d   : > { %v875_v39 = vpop.permute.xlu2 %874 }
 0x245   : > { %v932_v49 = vpop.permute.xlu2 %931 }
 0x24b   : > { %v802_v35 = vpop.permute.xlu1 %801 }
 0x24c   : > { %v800_v36 = vpop.permute.xlu0 %799 }
 0x24d   : > { %v804_v37 = vsel %vm803_vm3, %v798_v34, %v800_v36  ;;  %v805_v38 = vsel %vm803_vm3, %v800_v36, %v802_v35 }
 0x24e   : > { %v810_v40 = vsel %vm485_vm0, %v804_v37, 0  ;;  %v813_v41 = vsel %vm485_vm0, %v805_v38, 0 }
 0x24f   : > { %822 = vmatpush.bf16.msra.mxu0 %v810_v40  ;;  %835 = vmatpush.bf16.msra.mxu1 %v813_v41  ;;  %v1009_v58 = vpop.permute.xlu2 %1008 }
 0x252   : > { %1451 = vmatmul.msk.bf16.vlgmr.msra.gmra.mxu0 %vm481_vm1, %v1450_v42  ;;  %1452 = vmatmul.msk.bf16.vlgmr.msra.gmra.mxu1 %vm481_vm1, %v1450_v42 }
 0x253   : > { %v879_v43 = vpop.permute.xlu1 %878 }
 0x255   : > { %v877_v44 = vpop.permute.xlu0 %876 }
 0x256   : > { %v881_v45 = vsel %vm880_vm4, %v875_v39, %v877_v44  ;;  %v882_v46 = vsel %vm880_vm4, %v877_v44, %v879_v43 }
 0x257   : > { %v887_v47 = vsel %vm485_vm0, %v881_v45, 0  ;;  %v890_v48 = vsel %vm485_vm0, %v882_v46, 0  ;;  %v1086_v2 = vpop.permute.xlu2 %1085 }
 0x258   : > { %899 = vmatpush.bf16.msra.mxu2 %v887_v47  ;;  %912 = vmatpush.bf16.msra.mxu3 %v890_v48  ;;  %v697_v31 = vpop.f32.mrf.mxu0 }
 0x259   : > { %v710_v32 = vpop.f32.mrf.mxu1 }
 0x25b   : > { %1454 = vmatmul.msk.bf16.vlgmr.msra.gmra.mxu2 %vm481_vm1, %v1453_v50  ;;  %1455 = vmatmul.msk.bf16.vlgmr.msra.gmra.mxu3 %vm481_vm1, %v1453_v50  ;;  %v936_v51 = vpop.permute.xlu1 %935 }
 0x25d   : > { %v934_v52 = vpop.permute.xlu0 %933 }
 0x25e   : > { %v938_v53 = vsel %vm937_vm5, %v932_v49, %v934_v52  ;;  %v939_v54 = vsel %vm937_vm5, %v934_v52, %v936_v51 }
 0x25f   : > { %v944_v55 = vsel %vm485_vm0, %v938_v53, 0  ;;  %v947_v56 = vsel %vm485_vm0, %v939_v54, 0  ;;  %v1143_v5 = vpop.permute.xlu2 %1142  ;;  %v745_v34 = vpop.f32.mrf.mxu3 }
 0x260   : > { %956 = vmatpush.bf16.msrb.mxu0 %v944_v55  ;;  %969 = vmatpush.bf16.msrb.mxu1 %v947_v56  ;;  %v732_v33 = vpop.f32.mrf.mxu2  ;;  %v699_v35 = vpop.f32.mrf.mxu0  ;;  %v746_v38 = vadd.f32 %v745_v34, %v710_v32 }
 0x261   : > { %v712_v36 = vpop.f32.mrf.mxu1  ;;  %v733_v37 = vadd.f32 %v732_v33, %v697_v31 }
 0x263   : > { %1457 = vmatmul.msk.bf16.vlgmr.msrb.gmra.mxu0 %vm481_vm1, %v1456_v57  ;;  %1458 = vmatmul.msk.bf16.vlgmr.msrb.gmra.mxu1 %vm481_vm1, %v1456_v57  ;;  %v1330_v57 = vld [vmem:[%s1794_s8 + $0x8] sm:$0xff] }
 0x264   : > { %1338 = vperm.xlu1 %1508, %v1330_v57  }
 0x265   : > { %v1013_v59 = vpop.permute.xlu1 %1012 }
 0x266   : > { %v1011_v60 = vpop.permute.xlu0 %1010 }
 0x267   : > { %v1015_v61 = vsel %vm1014_vm6, %v1009_v58, %v1011_v60  ;;  %v1016_v62 = vsel %vm1014_vm6, %v1011_v60, %v1013_v59  ;;  %v747_v40 = vpop.f32.mrf.mxu3 }
 0x268   : > { %v1021_v63 = vsel %vm485_vm0, %v1015_v61, 0  ;;  %v1024_v0 = vsel %vm485_vm0, %v1016_v62, 0  ;;  %v1220_v20 = vpop.permute.xlu2 %1219  ;;  %v734_v39 = vpop.f32.mrf.mxu2 }
 0x269   : > { %1033 = vmatpush.bf16.msrb.mxu2 %v1021_v63  ;;  %1046 = vmatpush.bf16.msrb.mxu3 %v1024_v0  ;;  %v1345_v0 = vld [vmem:[%s1795_s9] sm:$0xff] }
 0x26c   : > { %1460 = vmatmul.msk.bf16.vlgmr.msrb.gmra.mxu2 %vm481_vm1, %v1459_v1  ;;  %1461 = vmatmul.msk.bf16.vlgmr.msrb.gmra.mxu3 %vm481_vm1, %v1459_v1 }
 0x26d   : > { %v1090_v3 = vpop.permute.xlu1 %1089  ;;  %1349 = vperm.xlu1 %1508, %v1345_v0  }
 0x26f   : > { %v1088_v6 = vpop.permute.xlu0 %1087 }
 0x270   : > { %v1092_v7 = vsel %vm1091_vm7, %v1086_v2, %v1088_v6  ;;  %v1093_v8 = vsel %vm1091_vm7, %v1088_v6, %v1090_v3  ;;  %v1269_v18 = vpop.permute.xlu2 %1268 }
 0x271   : > { %v1098_v9 = vsel %vm485_vm0, %v1092_v7, 0  ;;  %v1101_v10 = vsel %vm485_vm0, %v1093_v8, 0 }
 0x272   : > { %1110 = vmatpush.bf16.msra.mxu0 %v1098_v9  ;;  %1123 = vmatpush.bf16.msra.mxu1 %v1101_v10 }
 0x275   : > { %1463 = vmatmul.msk.bf16.vlgmr.msra.gmra.mxu0 %vm481_vm1, %v1462_v11  ;;  %1464 = vmatmul.msk.bf16.vlgmr.msra.gmra.mxu1 %vm481_vm1, %v1462_v11  ;;  %v1147_v12 = vpop.permute.xlu1 %1146 }
 0x277   : > { %v1145_v13 = vpop.permute.xlu0 %1144 }
 0x278   : > { %v1149_v14 = vsel %vm1148_vm8, %v1143_v5, %v1145_v13  ;;  %v1150_v15 = vsel %vm1148_vm8, %v1145_v13, %v1147_v12  ;;  %v528_v39 = vpop.permute.xlu2 %527 }
 0x279   : > { %v1155_v16 = vsel %vm485_vm0, %v1149_v14, 0  ;;  %v1158_v17 = vsel %vm485_vm0, %v1150_v15, 0 }
 0x27a   : > { %1167 = vmatpush.bf16.msra.mxu2 %v1155_v16  ;;  %1180 = vmatpush.bf16.msra.mxu3 %v1158_v17 }
 0x27d   : > { %1466 = vmatmul.msk.bf16.vlgmr.msra.gmra.mxu2 %vm481_vm1, %v1465_v19  ;;  %1467 = vmatmul.msk.bf16.vlgmr.msra.gmra.mxu3 %vm481_vm1, %v1465_v19 }
 0x27f   : > { %v1224_v4 = vpop.permute.xlu1 %1223 }
 0x280   : > { %v1222_v21 = vpop.permute.xlu0 %1221 }
 0x281   : > { %v1226_v22 = vsel %vm1225_vm9, %v1220_v20, %v1222_v21  ;;  %v1227_v23 = vsel %vm1225_vm9, %v1222_v21, %v1224_v4 }
 0x282   : > { %v1232_v24 = vsel %vm485_vm0, %v1226_v22, 0  ;;  %v1235_v25 = vsel %vm485_vm0, %v1227_v23, 0 }
 0x283   : > { %1244 = vmatpush.bf16.msrb.mxu0 %v1232_v24  ;;  %1257 = vmatpush.bf16.msrb.mxu1 %v1235_v25 }
 0x286   : > { %1469 = vmatmul.msk.bf16.vlgmr.msrb.gmra.mxu0 %vm481_vm1, %v1468_v28  ;;  %1470 = vmatmul.msk.bf16.vlgmr.msrb.gmra.mxu1 %vm481_vm1, %v1468_v28 }
 0x288   : > { %v1277_v20 = vpop.permute.xlu0 %1276 }
 0x2cf   : > { %v824_v41 = vpop.f32.mrf.mxu0  ;;  %v837_v42 = vpop.f32.mrf.mxu1 }
 0x2d0   : > { %v841_v58 = vadd.f32 %v824_v41, %v733_v37  ;;  %v842_v59 = vadd.f32 %v837_v42, %v746_v38  ;;  %v1482_v37 = vld [vmem:[%s1793_s7] sm:$0xff]  ;;  %v523_v38 = vpop.permute.xlu1 %522  ;;  %v1334_v41 = vpop.permute.xlu0 %1333 }
 0x2d1   : > { %v530_v42 = vmul.f32 %v523_v38, %v1751_v27  ;;  %v533_v27 = vmul.f32 %v528_v39, %v1758_v29 }
 0x2d7   : > { %v826_v43 = vpop.f32.mrf.mxu0  ;;  %v839_v44 = vpop.f32.mrf.mxu1 }
 0x2d8   : > { %v1339_v40 = vpop.permute.xlu1 %1338  ;;  %v531_v43 = vmul.f32 %v523_v38, %v1749_v26  ;;  %v539_v44 = vpop.permute.xlu2 %538  ;;  %v532_v26 = vmul.f32 %v528_v39, %v1760_v30 }
 0x2de   : > { %v901_v45 = vpop.f32.mrf.mxu2  ;;  %v914_v46 = vpop.f32.mrf.mxu3 }
 0x2df   : > { %v918_v60 = vadd.f32 %v901_v45, %v841_v58  ;;  %v919_v61 = vadd.f32 %v914_v46, %v842_v59 }
 0x2e0   : > { %v958_v47 = vpop.f32.mrf.mxu0  ;;  %v971_v48 = vpop.f32.mrf.mxu1 }
 0x2e1   : > { %v975_v1 = vadd.f32 %v958_v47, %v918_v60  ;;  %v976_v2 = vadd.f32 %v971_v48, %v919_v61 }
 0x2e6   : > { %v903_v49 = vpop.f32.mrf.mxu2  ;;  %v916_v50 = vpop.f32.mrf.mxu3 }
 0x2e7   : > { %v1350_v49 = vpop.permute.xlu1 %1349  ;;  %v546_v50 = vadd.f32 %v539_v44, %v530_v42 }
 0x2e8   : > { %v960_v51 = vpop.f32.mrf.mxu0  ;;  %v973_v52 = vpop.f32.mrf.mxu1 }
 0x2e9   : > { %v547_v51 = vadd.f32 %v539_v44, %v531_v43 }
 0x2ef   : > { %v1035_v53 = vpop.f32.mrf.mxu2  ;;  %v1048_v54 = vpop.f32.mrf.mxu3 }
 0x2f0   : > { %v1052_v7 = vadd.f32 %v1035_v53, %v975_v1  ;;  %v1053_v8 = vadd.f32 %v1048_v54, %v976_v2 }
 0x2f2   : > { %v1112_v55 = vpop.f32.mrf.mxu0  ;;  %v1125_v56 = vpop.f32.mrf.mxu1 }
 0x2f3   : > { %v1129_v9 = vadd.f32 %v1112_v55, %v1052_v7  ;;  %v1130_v10 = vadd.f32 %v1125_v56, %v1053_v8  ;;  %v544_v56 = vpop.permute.xlu0 %543 }
 0x2f4   : > { %v548_v0 = vadd.f32 %v544_v56, %v532_v26  ;;  %v549_v1 = vadd.f32 %v544_v56, %v533_v27 }
 0x2f7   : > { %v1037_v62 = vpop.f32.mrf.mxu2  ;;  %v1050_v63 = vpop.f32.mrf.mxu3 }
 0x2f8   : > { %v1355_v63 = vpop.permute.xlu2 %1354 }
 0x2fa   : > { %v1114_v3 = vpop.f32.mrf.mxu0  ;;  %v1127_v6 = vpop.f32.mrf.mxu1 }
 0x300   : > { %v1169_v11 = vpop.f32.mrf.mxu2  ;;  %v1182_v12 = vpop.f32.mrf.mxu3 }
 0x301   : > { %v1186_v5 = vadd.f32 %v1169_v11, %v1129_v9  ;;  %v1187_v13 = vadd.f32 %v1182_v12, %v1130_v10 }
 0x303   : > { %v1246_v14 = vpop.f32.mrf.mxu0  ;;  %v1259_v15 = vpop.f32.mrf.mxu1 }
 0x304   : > { %v1263_v16 = vadd.f32 %v1246_v14, %v1186_v5  ;;  %v1264_v17 = vadd.f32 %v1259_v15, %v1187_v13 }
 0x306   : > { %v1271_v19 = vmul.f32 %v1269_v18, %v1263_v16  ;;  %v1272_v4 = vmul.f32 %v1269_v18, %v1264_v17 }
 0x308   : > { %v1279_v21 = vadd.f32 %v1277_v20, %v1271_v19  ;;  %v1280_v22 = vadd.f32 %v1277_v20, %v1272_v4  ;;  %v1171_v23 = vpop.f32.mrf.mxu2  ;;  %v1184_v24 = vpop.f32.mrf.mxu3 }
 0x30a   : > { %v1281_v25 = vmax.f32 %v1279_v21, 0.0  ;;  %v1282_v28 = vmax.f32 %v1280_v22, 0.0 }
 0x30b   : > { %v1248_v31 = vpop.f32.mrf.mxu0  ;;  %v1261_v32 = vpop.f32.mrf.mxu1 }
 0x30c   : > { %v1285_v33 = vpack.c.bf16 %v1281_v25, %v1281_v25  ;;  %v1286_v34 = vpack.c.bf16 %v1282_v28, %v1282_v28 }
 0x30e   : > { %v1296_v35 = vsel %vm485_vm0, %v1285_v33, 0  ;;  %v1299_v36 = vsel %vm485_vm0, %v1286_v34, 0 }
 0x30f   : > { %1308 = vmatpush.bf16.msrb.mxu2 %v1296_v35  ;;  %1322 = vmatpush.bf16.msrb.mxu3 %v1299_v36 }
 0x312   : > { %1475 = vmatmul.msk.bf16.vlgmr.msrb.gmra.mxu2 %vm481_vm1, %v1482_v37  ;;  %1476 = vmatmul.msk.bf16.vlgmr.msrb.gmra.mxu3 %vm481_vm1, %v1482_v37 }
 0x395   : > { %v1310_v45 = vpop.f32.mrf.mxu2  ;;  %v1324_v46 = vpop.f32.mrf.mxu3 }
 0x396   : > { %v1341_v47 = vmul.f32 %v1334_v41, %v1310_v45  ;;  %v1342_v48 = vmul.f32 %v1334_v41, %v1324_v46 }
 0x398   : > { %v1357_v52 = vadd.f32 %v1350_v49, %v1341_v47  ;;  %v1358_v53 = vadd.f32 %v1350_v49, %v1342_v48 }
 0x39a   : > { %v1361_v54 = vadd.f32 %v1357_v52, %v546_v50  ;;  %v1362_v55 = vadd.f32 %v1358_v53, %v547_v51 }
 0x39c   : > { %v1365_v57 = vmax.f32 %v1361_v54, 0.0  ;;  %v1366_v58 = vmax.f32 %v1362_v55, 0.0 }
 0x39d   : > { %v1312_v59 = vpop.f32.mrf.mxu2  ;;  %v1326_v60 = vpop.f32.mrf.mxu3 }
 0x39e   : > { %1369 = vst [vmem:[%s467_s16] sm:$0xff] %v1365_v57  ;;  %v1343_v61 = vmul.f32 %v1339_v40, %v1312_v59  ;;  %v1344_v62 = vmul.f32 %v1339_v40, %v1326_v60 }
 0x39f   : > { %1370 = vst [vmem:[%s467_s16 + $0x8] sm:$0xff] %v1366_v58 }
 0x3a0   : > { %v1359_v2 = vadd.f32 %v1355_v63, %v1343_v61  ;;  %v1360_v3 = vadd.f32 %v1355_v63, %v1344_v62 }
 0x3a2   : > { %v1363_v6 = vadd.f32 %v1359_v2, %v548_v0  ;;  %v1364_v7 = vadd.f32 %v1360_v3, %v549_v1 }
 0x3a4   : > { %v1367_v8 = vmax.f32 %v1363_v6, 0.0  ;;  %v1368_v29 = vmax.f32 %v1364_v7, 0.0 }
 0x3a6   : > { %1371 = vst [vmem:[%s467_s16 + $0x10] sm:$0xff] %v1367_v8 }
 0x3a7   : > { %1372 = vst [vmem:[%s467_s16 + $0x18] sm:$0xff] %v1368_v29 }
 0x3a8 PF: > { %s24_s29 = sadd.s32 1, %s1515_s29  }
 0x3a9   : > { %p21_p4 = scmp.ge.s32.totalorder %s24_s29, 4  }
 0x3ab   :  { %23 = sbr.rel (!%p21_p4) target bundleno = 1 (0x1), region = 119 }

</bundles_post_ra>
